<compile_context>
chip_gen: v7x
topology: tpu7x:2x2x1
jax: 0.10.0
libtpu: 0.0.40
codegen_flags: <defaults>
</compile_context>

<pallas_src>
import functools

import jax
import jax.numpy as jnp
from jax.experimental import pallas as pl
from jax.experimental.pallas import tpu as pltpu

HIDDEN = 32   # hidden_dims = [32, 32]
LANE = 128    # padded lane width for hidden layers


def _round_up(x, m):
    return ((x + m - 1) // m) * m


def _critic_kernel(obs_ref, act_ref,
                   w1o_ref, w1a_ref, b1_ref,
                   w2_ref, b2_ref,
                   w3_ref, b3_ref,
                   out_ref):
    # Layer 1: concat-free  (obs @ W1[:obs_dim] + act @ W1[obs_dim:]) + b1, ReLU
    h1 = jnp.dot(obs_ref[...], w1o_ref[...], preferred_element_type=jnp.float32)
    h1 = h1 + jnp.dot(act_ref[...], w1a_ref[...], preferred_element_type=jnp.float32)
    h1 = jnp.maximum(h1 + b1_ref[...], 0.0)
    # Layer 2
    h2 = jnp.dot(h1, w2_ref[...], preferred_element_type=jnp.float32) + b2_ref[...]
    h2 = jnp.maximum(h2, 0.0)
    # Layer 3 (no activation). Only column 0 is live; store just that column so
    # the HBM output is (B, 1), not a 128-lane padded slab.
    out = jnp.dot(h2, w3_ref[...], preferred_element_type=jnp.float32) + b3_ref[...]
    out_ref[...] = out[:, :1].astype(out_ref.dtype)


def critic_forward_pallas(obs, action, params, *, tile_b=8192):
    """obs: (B, obs_dim) f32, action: (B, act_dim) f32.

    params = (W1, b1, W2, b2, W3, b3) in PyTorch nn.Linear convention:
      W1: (32, obs_dim+act_dim)  b1: (32,)
      W2: (32, 32)               b2: (32,)
      W3: (1, 32)                b3: (1,)
    Returns (B, 1) f32 = Q(s, a).
    """
    W1, b1, W2, b2, W3, b3 = params
    obs = jnp.asarray(obs, jnp.float32)
    action = jnp.asarray(action, jnp.float32)
    obs_dim = obs.shape[-1]
    act_dim = action.shape[-1]
    B = obs.shape[0]
    f32 = jnp.float32

    # Transpose to (in, out) and zero-pad hidden / output widths to 128 lanes.
    # Padded rows/cols and bias entries are exactly 0, so ReLU keeps the padded
    # lanes at 0 and they never contaminate the next layer.
    W1p = jnp.zeros((obs_dim + act_dim, LANE), f32).at[:, :HIDDEN].set(W1.T.astype(f32))
    W1o = W1p[:obs_dim]                      # (obs_dim, 128)
    W1a = W1p[obs_dim:]                      # (act_dim, 128)
    b1p = jnp.zeros((1, LANE), f32).at[0, :HIDDEN].set(b1.astype(f32))
    W2p = jnp.zeros((LANE, LANE), f32).at[:HIDDEN, :HIDDEN].set(W2.T.astype(f32))
    b2p = jnp.zeros((1, LANE), f32).at[0, :HIDDEN].set(b2.astype(f32))
    W3p = jnp.zeros((LANE, LANE), f32).at[:HIDDEN, :1].set(W3.T.astype(f32))
    b3p = jnp.zeros((1, LANE), f32).at[0, :1].set(b3.astype(f32))

    # Tiny batches only: pad up to the 8-row sublane minimum (negligible copy).
    # Large batches are streamed unpadded; the ragged last block is masked by
    # Pallas and the junk rows never reach HBM (no cross-row reduction in-kernel).
    B_eff = B
    if B < 8:
        obs = jnp.pad(obs, ((0, 8 - B), (0, 0)))
        action = jnp.pad(action, ((0, 8 - B), (0, 0)))
        B_eff = 8

    # --- row-tile selection ---
    tile_b = max(8, (int(tile_b) // 8) * 8)          # multiple of 8 (sublanes)
    tile_b = min(tile_b, 8192)                       # keeps per-step VMEM small on v7x
    # Keep >= 2 grid steps when possible so v7x's two TensorCores both get work.
    tile_b = min(tile_b, max(_round_up(pl.cdiv(B_eff, 2), 8), 8))
    grid = (pl.cdiv(B_eff, tile_b),)

    # Per-step VMEM: obs/act/out tiles all lane-pad their minor dim to 128
    # (512 B/row each), double-buffered, plus resident weights and headroom.
    lane_row_bytes = LANE * 4
    vmem_limit = min(max(3 * 2 * tile_b * lane_row_bytes + (8 << 20), 16 << 20),
                     48 << 20)                       # stay well under v7x's 64 MiB

    out = pl.pallas_call(
        _critic_kernel,
        out_shape=jax.ShapeDtypeStruct((B_eff, 1), f32),
        grid=grid,
        in_specs=[
            # Streamed inputs: tile over batch only.
            pl.BlockSpec((tile_b, obs_dim), lambda i: (i, 0)),
            pl.BlockSpec((tile_b, act_dim), lambda i: (i, 0)),
            # Tiny weights/biases: full-array blocks, resident across the grid.
            pl.BlockSpec((obs_dim, LANE), lambda i: (0, 0)),
            pl.BlockSpec((act_dim, LANE), lambda i: (0, 0)),
            pl.BlockSpec((1, LANE), lambda i: (0, 0)),
            pl.BlockSpec((LANE, LANE), lambda i: (0, 0)),
            pl.BlockSpec((1, LANE), lambda i: (0, 0)),
            pl.BlockSpec((LANE, LANE), lambda i: (0, 0)),
            pl.BlockSpec((1, LANE), lambda i: (0, 0)),
        ],
        out_specs=pl.BlockSpec((tile_b, 1), lambda i: (i, 0)),
        compiler_params=pltpu.CompilerParams(
            dimension_semantics=("parallel",),       # v7x: 2 TCs split the batch
            vmem_limit_bytes=vmem_limit,
        ),
    )(obs, action, W1o, W1a, b1p, W2p, b2p, W3p, b3p)

    return out[:B]


def critic_forward_ref(obs, action, params):
    """Pure-JAX reference matching the PyTorch module."""
    W1, b1, W2, b2, W3, b3 = params
    x = jnp.concatenate([obs, action], axis=-1)
    h1 = jnp.maximum(x @ W1.T + b1, 0.0)
    h2 = jnp.maximum(h1 @ W2.T + b2, 0.0)
    return h2 @ W3.T + b3


def _init_linear(key, out_dim, in_dim):
    # torch.nn.Linear default init: U(-1/sqrt(fan_in), 1/sqrt(fan_in))
    kw, kb = jax.random.split(key)
    bound = 1.0 / jnp.sqrt(jnp.float32(in_dim))
    W = jax.random.uniform(kw, (out_dim, in_dim), jnp.float32, -bound, bound)
    b = jax.random.uniform(kb, (out_dim,), jnp.float32, -bound, bound)
    return W, b


if __name__ == "__main__":
    key = jax.random.PRNGKey(0)
    obs_dim, act_dim = 11, 3

    k1, k2, k3 = jax.random.split(key, 3)
    W1, b1 = _init_linear(k1, HIDDEN, obs_dim + act_dim)
    W2, b2 = _init_linear(k2, HIDDEN, HIDDEN)
    W3, b3 = _init_linear(k3, 1, HIDDEN)
    params = (W1, b1, W2, b2, W3, b3)

    fwd = jax.jit(functools.partial(critic_forward_pallas, tile_b=8192))

    # Small case (B=2, pads to the 8-row sublane minimum) and a multi-step /
    # ragged-last-block case (B=300 -> 2 grid steps).
    for batch in (2, 300):
        k_obs, k_act = jax.random.split(jax.random.fold_in(key, batch))
        obs = jax.random.normal(k_obs, (batch, obs_dim), jnp.float32)
        action = jax.random.normal(k_act, (batch, act_dim), jnp.float32)

        q = jax.block_until_ready(fwd(obs, action, params))
        q_ref = critic_forward_ref(obs, action, params)

        assert q.shape == (batch, 1), q.shape
        assert jnp.allclose(q, q_ref, atol=1e-5, rtol=1e-5), (batch, q[:4], q_ref[:4])

    print("KERNEL_OK")
</pallas_src>

<mosaic_0001>
module attributes {stable_mosaic.version = 11 : i64} {
  func.func @_critic_kernel(%arg0: i32, %arg1: memref<8x11xf32, #tpu.memory_space<vmem>>, %arg2: memref<8x3xf32, #tpu.memory_space<vmem>>, %arg3: memref<11x128xf32, #tpu.memory_space<vmem>>, %arg4: memref<3x128xf32, #tpu.memory_space<vmem>>, %arg5: memref<1x128xf32, #tpu.memory_space<vmem>>, %arg6: memref<128x128xf32, #tpu.memory_space<vmem>>, %arg7: memref<1x128xf32, #tpu.memory_space<vmem>>, %arg8: memref<128x128xf32, #tpu.memory_space<vmem>>, %arg9: memref<1x128xf32, #tpu.memory_space<vmem>>, %arg10: memref<8x1xf32, #tpu.memory_space<vmem>>) attributes {dimension_semantics = [#tpu.dimension_semantics<parallel>], iteration_bounds = array<i64: 1>, scalar_prefetch = 0 : i64, scratch_operands = 0 : i64, tpu.core_type = #tpu.core_type<tc>, window_params = [{transform_indices = @transform_0, window_bounds = array<i64: 8, 11>}, {transform_indices = @transform_1, window_bounds = array<i64: 8, 3>}, {pipeline_mode = #tpu.pipeline_mode<synchronous>, transform_indices = @transform_2, window_bounds = array<i64: 11, 128>}, {pipeline_mode = #tpu.pipeline_mode<synchronous>, transform_indices = @transform_3, window_bounds = array<i64: 3, 128>}, {pipeline_mode = #tpu.pipeline_mode<synchronous>, transform_indices = @transform_4, window_bounds = array<i64: 1, 128>}, {pipeline_mode = #tpu.pipeline_mode<synchronous>, transform_indices = @transform_5, window_bounds = array<i64: 128, 128>}, {pipeline_mode = #tpu.pipeline_mode<synchronous>, transform_indices = @transform_6, window_bounds = array<i64: 1, 128>}, {pipeline_mode = #tpu.pipeline_mode<synchronous>, transform_indices = @transform_7, window_bounds = array<i64: 128, 128>}, {pipeline_mode = #tpu.pipeline_mode<synchronous>, transform_indices = @transform_8, window_bounds = array<i64: 1, 128>}, {transform_indices = @transform_9, window_bounds = array<i64: 8, 1>}]} {
    %c0 = arith.constant 0 : index
    %c0_0 = arith.constant 0 : index
    %0 = vector.load %arg1[%c0, %c0_0] : memref<8x11xf32, #tpu.memory_space<vmem>>, vector<8x11xf32>
    %c0_1 = arith.constant 0 : index
    %c0_2 = arith.constant 0 : index
    %1 = vector.load %arg3[%c0_1, %c0_2] : memref<11x128xf32, #tpu.memory_space<vmem>>, vector<11x128xf32>
    %cst = arith.constant dense<0.000000e+00> : vector<8x128xf32>
    %2 = tpu.matmul %0, %1, %cst {dimension_numbers = #tpu.dot_dimension_numbers<[1], [0], [0], [1], [0, 0, 1, 1], [], []>} : vector<8x11xf32>, vector<11x128xf32>, vector<8x128xf32> -> vector<8x128xf32>
    %c0_3 = arith.constant 0 : index
    %c0_4 = arith.constant 0 : index
    %3 = vector.load %arg2[%c0_3, %c0_4] : memref<8x3xf32, #tpu.memory_space<vmem>>, vector<8x3xf32>
    %c0_5 = arith.constant 0 : index
    %c0_6 = arith.constant 0 : index
    %4 = vector.load %arg4[%c0_5, %c0_6] : memref<3x128xf32, #tpu.memory_space<vmem>>, vector<3x128xf32>
    %cst_7 = arith.constant dense<0.000000e+00> : vector<8x128xf32>
    %5 = tpu.matmul %3, %4, %cst_7 {dimension_numbers = #tpu.dot_dimension_numbers<[1], [0], [0], [1], [0, 0, 1, 1], [], []>} : vector<8x3xf32>, vector<3x128xf32>, vector<8x128xf32> -> vector<8x128xf32>
    %6 = arith.addf %2, %5 : vector<8x128xf32>
    %c0_8 = arith.constant 0 : index
    %c0_9 = arith.constant 0 : index
    %7 = vector.load %arg5[%c0_8, %c0_9] : memref<1x128xf32, #tpu.memory_space<vmem>>, vector<1x128xf32>
    %8 = vector.broadcast %7 : vector<1x128xf32> to vector<8x128xf32>
    %9 = arith.addf %6, %8 : vector<8x128xf32>
    %cst_10 = arith.constant 0.000000e+00 : f32
    %10 = vector.broadcast %cst_10 : f32 to vector<8x128xf32>
    %11 = arith.maximumf %9, %10 : vector<8x128xf32>
    %c0_11 = arith.constant 0 : index
    %c0_12 = arith.constant 0 : index
    %12 = vector.load %arg6[%c0_11, %c0_12] : memref<128x128xf32, #tpu.memory_space<vmem>>, vector<128x128xf32>
    %cst_13 = arith.constant dense<0.000000e+00> : vector<8x128xf32>
    %13 = tpu.matmul %11, %12, %cst_13 {dimension_numbers = #tpu.dot_dimension_numbers<[1], [0], [0], [1], [0, 0, 1, 1], [], []>} : vector<8x128xf32>, vector<128x128xf32>, vector<8x128xf32> -> vector<8x128xf32>
    %c0_14 = arith.constant 0 : index
    %c0_15 = arith.constant 0 : index
    %14 = vector.load %arg7[%c0_14, %c0_15] : memref<1x128xf32, #tpu.memory_space<vmem>>, vector<1x128xf32>
    %15 = vector.broadcast %14 : vector<1x128xf32> to vector<8x128xf32>
    %16 = arith.addf %13, %15 : vector<8x128xf32>
    %cst_16 = arith.constant 0.000000e+00 : f32
    %17 = vector.broadcast %cst_16 : f32 to vector<8x128xf32>
    %18 = arith.maximumf %16, %17 : vector<8x128xf32>
    %c0_17 = arith.constant 0 : index
    %c0_18 = arith.constant 0 : index
    %19 = vector.load %arg8[%c0_17, %c0_18] : memref<128x128xf32, #tpu.memory_space<vmem>>, vector<128x128xf32>
    %cst_19 = arith.constant dense<0.000000e+00> : vector<8x128xf32>
    %20 = tpu.matmul %18, %19, %cst_19 {dimension_numbers = #tpu.dot_dimension_numbers<[1], [0], [0], [1], [0, 0, 1, 1], [], []>} : vector<8x128xf32>, vector<128x128xf32>, vector<8x128xf32> -> vector<8x128xf32>
    %c0_20 = arith.constant 0 : index
    %c0_21 = arith.constant 0 : index
    %21 = vector.load %arg9[%c0_20, %c0_21] : memref<1x128xf32, #tpu.memory_space<vmem>>, vector<1x128xf32>
    %22 = vector.broadcast %21 : vector<1x128xf32> to vector<8x128xf32>
    %23 = arith.addf %20, %22 : vector<8x128xf32>
    %24 = vector.extract_strided_slice %23 {offsets = [0, 0], sizes = [8, 1], strides = [1, 1]} : vector<8x128xf32> to vector<8x1xf32>
    %c0_22 = arith.constant 0 : index
    %c0_23 = arith.constant 0 : index
    %25 = vector.load %arg10[%c0_22, %c0_23] : memref<8x1xf32, #tpu.memory_space<vmem>>, vector<8x1xf32>
    tpu.vector_store %arg10[%c0_22, %c0_23], %24 {strides = array<i32>} : memref<8x1xf32, #tpu.memory_space<vmem>>, vector<8x1xf32>,
    return
  }
  func.func @transform_0(%arg0: i32) -> (i32, i32) {
    %c0_i32 = arith.constant 0 : i32
    %c0_i32_0 = arith.constant 0 : i32
    return %arg0, %c0_i32 : i32, i32
  }
  func.func @transform_1(%arg0: i32) -> (i32, i32) {
    %c0_i32 = arith.constant 0 : i32
    %c0_i32_0 = arith.constant 0 : i32
    return %arg0, %c0_i32 : i32, i32
  }
  func.func @transform_2(%arg0: i32) -> (i32, i32) {
    %c0_i32 = arith.constant 0 : i32
    %c0_i32_0 = arith.constant 0 : i32
    %c0_i32_1 = arith.constant 0 : i32
    return %c0_i32, %c0_i32_0 : i32, i32
  }
  func.func @transform_3(%arg0: i32) -> (i32, i32) {
    %c0_i32 = arith.constant 0 : i32
    %c0_i32_0 = arith.constant 0 : i32
    %c0_i32_1 = arith.constant 0 : i32
    return %c0_i32, %c0_i32_0 : i32, i32
  }
  func.func @transform_4(%arg0: i32) -> (i32, i32) {
    %c0_i32 = arith.constant 0 : i32
    %c0_i32_0 = arith.constant 0 : i32
    %c0_i32_1 = arith.constant 0 : i32
    return %c0_i32, %c0_i32_0 : i32, i32
  }
  func.func @transform_5(%arg0: i32) -> (i32, i32) {
    %c0_i32 = arith.constant 0 : i32
    %c0_i32_0 = arith.constant 0 : i32
    %c0_i32_1 = arith.constant 0 : i32
    return %c0_i32, %c0_i32_0 : i32, i32
  }
  func.func @transform_6(%arg0: i32) -> (i32, i32) {
    %c0_i32 = arith.constant 0 : i32
    %c0_i32_0 = arith.constant 0 : i32
    %c0_i32_1 = arith.constant 0 : i32
    return %c0_i32, %c0_i32_0 : i32, i32
  }
  func.func @transform_7(%arg0: i32) -> (i32, i32) {
    %c0_i32 = arith.constant 0 : i32
    %c0_i32_0 = arith.constant 0 : i32
    %c0_i32_1 = arith.constant 0 : i32
    return %c0_i32, %c0_i32_0 : i32, i32
  }
  func.func @transform_8(%arg0: i32) -> (i32, i32) {
    %c0_i32 = arith.constant 0 : i32
    %c0_i32_0 = arith.constant 0 : i32
    %c0_i32_1 = arith.constant 0 : i32
    return %c0_i32, %c0_i32_0 : i32, i32
  }
  func.func @transform_9(%arg0: i32) -> (i32, i32) {
    %c0_i32 = arith.constant 0 : i32
    %c0_i32_0 = arith.constant 0 : i32
    return %arg0, %c0_i32 : i32, i32
  }
}

</mosaic_0001>

<bundles_post_ra>
// kernel: critic_forward_pallas.1
= control target key start
LH: loop header
LB: loop body
LE: loop exit
PB: predicated region body
PF: predicated region fallthrough
CT: control target
= control target key end

     0   :  { %vm41_vm0 = vcmask 1042432   ;;  %v578_v0 = vmov 0.0|0.0   ;;  %v579_v1 = vmov 0.0   ;;  %vm580_vm1 = vmmov 1   ;;  %s778_s2 = inlined_call_operand.vmem [shape: f32[11,128], index: 2, kind: input, shape index: {}]   ;;  %s779_s3 = inlined_call_operand.vmem [shape: f32[3,128], index: 3, kind: input, shape index: {}]   ;;  %s780_s1 = inlined_call_operand.vmem [shape: f32[8,3], index: 1, kind: input, shape index: {}]   ;;  %s781_s5 = inlined_call_operand.vmem [shape: f32[128,128], index: 5, kind: input, shape index: {}]   ;;  %s782_s0 = inlined_call_operand.vmem [shape: f32[8,11], index: 0, kind: input, shape index: {}]   ;;  %s783_s7 = inlined_call_operand.vmem [shape: f32[128,128], index: 7, kind: input, shape index: {}]   ;;  %s784_s4 = inlined_call_operand.vmem [shape: f32[1,128], index: 4, kind: input, shape index: {}]   ;;  %s785_s6 = inlined_call_operand.vmem [shape: f32[1,128], index: 6, kind: input, shape index: {}]   ;;  %s786_s8 = inlined_call_operand.vmem [shape: f32[1,128], index: 8, kind: input, shape index: {}]   ;;  %s787_s9 = inlined_call_operand.vmem [shape: f32[8,1], index: 9, kind: output, shape index: {}]  }
   0x1   :  { %522 = vmatprep.subr.bf16.mxu1 %v578_v0  ;;  %440 = vmatprep.subr.mxu0 %v579_v1  ;;  %v33_v2 = vld [vmem:[%s778_s2] sm:$0xff]  ;;  %v34_v3 = vld [vmem:[%s778_s2 + $0x8] sm:$0x7]  ;;  %vm524_vm2 = vmpackc.low %vm41_vm0, %vm580_vm1  ;;  %vm37_vm3 = vcmask 23552   ;;  %vm581_vm4 = vmmov 0   ;;  %vm115_vm5 = vcmask 89088  }
   0x2   :  { %v523_v4 = vpack.c.bf16 %v34_v3, %v33_v2  ;;  %v36_v5 = vld [vmem:[%s779_s3] sm:$0x7]  ;;  %442 = vmatprep.mubr.msk.f32.mxu0 %vm581_vm4, %v579_v1  ;;  %449 = vmatprep.mubr.msk.f32.mxu1 %vm581_vm4, %v579_v1  ;;  %v202_v8 = vld [vmem:[%s781_s5 + $0x8] sm:$0xff]  ;;  %v203_v9 = vld [vmem:[%s781_s5 + $0x10] sm:$0xff]  ;;  %vm388_vm6 = vcmask 7168  }
   0x3   :  { %v35_v6 = vld [vmem:[%s780_s1] sm:$0xff]  ;;  %441 = vmatpush3.msk.msra.mxu0 %vm41_vm0, %v36_v5  ;;  %v204_v12 = vld [vmem:[%s781_s5 + $0x18] sm:$0xff]  ;;  %v206_v15 = vld [vmem:[%s781_s5 + $0x28] sm:$0xff] }
   0x4   :  { %v201_v7 = vld [vmem:[%s781_s5] sm:$0xff]  ;;  %525 = vmatpush3.bf16.msk.msra.mxu1 %vm524_vm2, %v523_v4  ;;  %443 = vmatmul.mubr.msk.f32.vlgmr.msra.gmra.mrb[0].mxu0 %vm37_vm3, %v35_v6  ;;  %v530_v13 = vpack.c.bf16 %v204_v12, %v203_v9  ;;  %v207_v17 = vld [vmem:[%s781_s5 + $0x30] sm:$0xff]  ;;  %v208_v18 = vld [vmem:[%s781_s5 + $0x38] sm:$0xff] }
   0x5   :  { %v32_v10 = vld [vmem:[%s782_s0] sm:$0xff]  ;;  %v527_v11 = vpack.c.bf16 %v202_v8, %v201_v7  ;;  %526 = vmatprep.subr.bf16.mxu0 %v578_v0  ;;  %484 = vmatprep.mubr.msk.f32.mxu0 %vm581_vm4, %v579_v1  ;;  %v536_v19 = vpack.c.bf16 %v208_v18, %v207_v17  ;;  %v210_v21 = vld [vmem:[%s781_s5 + $0x48] sm:$0xff]  ;;  %v211_v23 = vld [vmem:[%s781_s5 + $0x50] sm:$0xff] }
   0x6   :  { %550 = vmatprep.subr.bf16.mxu1 %v578_v0  ;;  %v205_v14 = vld [vmem:[%s781_s5 + $0x20] sm:$0xff]  ;;  %v212_v24 = vld [vmem:[%s781_s5 + $0x58] sm:$0xff]  ;;  %v214_v27 = vld [vmem:[%s781_s5 + $0x68] sm:$0xff] }
   0x7   :  { %528 = vmatpush3.bf16.msra.mxu0 %v527_v11  ;;  %450 = vmatmul.mubr.msk.f32.vlgmr.msra.gmra.mrb[0].mxu1 %vm115_vm5, %v32_v10  ;;  %v533_v16 = vpack.c.bf16 %v206_v15, %v205_v14  ;;  %v209_v20 = vld [vmem:[%s781_s5 + $0x40] sm:$0xff]  ;;  %v542_v25 = vpack.c.bf16 %v212_v24, %v211_v23  ;;  %v215_v29 = vld [vmem:[%s781_s5 + $0x70] sm:$0xff]  ;;  %v216_v30 = vld [vmem:[%s781_s5 + $0x78] sm:$0xff] }
   0x8   :  { %529 = vmatprep.subr.bf16.mxu0 %v578_v0  ;;  %519 = vmatprep.mubr.msk.f32.mxu1 %vm581_vm4, %v579_v1  ;;  %v539_v22 = vpack.c.bf16 %v210_v21, %v209_v20  ;;  %v213_v26 = vld [vmem:[%s781_s5 + $0x60] sm:$0xff]  ;;  %v548_v31 = vpack.c.bf16 %v216_v30, %v215_v29  ;;  %v296_v33 = vld [vmem:[%s783_s7 + $0x8] sm:$0xff]  ;;  %v297_v34 = vld [vmem:[%s783_s7 + $0x10] sm:$0xff] }
   0x9   :  { %v545_v28 = vpack.c.bf16 %v214_v27, %v213_v26  ;;  %v295_v32 = vld [vmem:[%s783_s7] sm:$0xff]  ;;  %v298_v36 = vld [vmem:[%s783_s7 + $0x18] sm:$0xff]  ;;  %v300_v39 = vld [vmem:[%s783_s7 + $0x28] sm:$0xff] }
   0xa   :  { %v551_v35 = vpack.c.bf16 %v296_v33, %v295_v32  ;;  %v554_v37 = vpack.c.bf16 %v298_v36, %v297_v34  ;;  %v299_v38 = vld [vmem:[%s783_s7 + $0x20] sm:$0xff]  ;;  %v301_v41 = vld [vmem:[%s783_s7 + $0x30] sm:$0xff]  ;;  %v302_v42 = vld [vmem:[%s783_s7 + $0x38] sm:$0xff] }
   0xb   :  { %531 = vmatpush3.bf16.msra.mxu0 %v530_v13  ;;  %v557_v40 = vpack.c.bf16 %v300_v39, %v299_v38  ;;  %v560_v43 = vpack.c.bf16 %v302_v42, %v301_v41  ;;  %v303_v44 = vld [vmem:[%s783_s7 + $0x40] sm:$0xff]  ;;  %v304_v45 = vld [vmem:[%s783_s7 + $0x48] sm:$0xff]  ;;  %v305_v47 = vld [vmem:[%s783_s7 + $0x50] sm:$0xff] }
   0xc   :  { %532 = vmatprep.subr.bf16.mxu0 %v578_v0  ;;  %552 = vmatpush3.bf16.msra.mxu1 %v551_v35  ;;  %v563_v46 = vpack.c.bf16 %v304_v45, %v303_v44  ;;  %v306_v48 = vld [vmem:[%s783_s7 + $0x58] sm:$0xff]  ;;  %v307_v50 = vld [vmem:[%s783_s7 + $0x60] sm:$0xff]  ;;  %v308_v51 = vld [vmem:[%s783_s7 + $0x68] sm:$0xff] }
   0xd   :  { %553 = vmatprep.subr.bf16.mxu1 %v578_v0  ;;  %v566_v49 = vpack.c.bf16 %v306_v48, %v305_v47  ;;  %v569_v52 = vpack.c.bf16 %v308_v51, %v307_v50  ;;  %v398_v56 = vld [vmem:[%s784_s4] ss:$0 sm:$0xff]  ;;  %v309_v61 = vld [vmem:[%s783_s7 + $0x70] sm:$0xff]  ;;  %v310_v62 = vld [vmem:[%s783_s7 + $0x78] sm:$0xff] }
   0xe   :  { %v572_v63 = vpack.c.bf16 %v310_v62, %v309_v61  ;;  %v400_v5 = vld [vmem:[%s786_s8] ss:$0 sm:$0xff] }
   0xf   :  { %534 = vmatpush3.bf16.msra.mxu0 %v533_v16 }
  0x10   :  { %535 = vmatprep.subr.bf16.mxu0 %v578_v0  ;;  %555 = vmatpush3.bf16.msra.mxu1 %v554_v37 }
  0x11   :  { %556 = vmatprep.subr.bf16.mxu1 %v578_v0 }
  0x13   :  { %537 = vmatpush3.bf16.msra.mxu0 %v536_v19 }
  0x14   :  { %538 = vmatprep.subr.bf16.mxu0 %v578_v0  ;;  %558 = vmatpush3.bf16.msra.mxu1 %v557_v40 }
  0x15   :  { %559 = vmatprep.subr.bf16.mxu1 %v578_v0 }
  0x17   :  { %540 = vmatpush3.bf16.msra.mxu0 %v539_v22 }
  0x18   :  { %541 = vmatprep.subr.bf16.mxu0 %v578_v0  ;;  %561 = vmatpush3.bf16.msra.mxu1 %v560_v43 }
  0x19   :  { %562 = vmatprep.subr.bf16.mxu1 %v578_v0 }
  0x1b   :  { %543 = vmatpush3.bf16.msra.mxu0 %v542_v25 }
  0x1c   :  { %544 = vmatprep.subr.bf16.mxu0 %v578_v0  ;;  %564 = vmatpush3.bf16.msra.mxu1 %v563_v46 }
  0x1d   :  { %565 = vmatprep.subr.bf16.mxu1 %v578_v0 }
  0x1f   :  { %546 = vmatpush3.bf16.msra.mxu0 %v545_v28 }
  0x20   :  { %547 = vmatprep.subr.bf16.mxu0 %v578_v0  ;;  %567 = vmatpush3.bf16.msra.mxu1 %v566_v49 }
  0x21   :  { %568 = vmatprep.subr.bf16.mxu1 %v578_v0 }
  0x23   :  { %549 = vmatpush3.bf16.msra.mxu0 %v548_v31 }
  0x24   :  { %570 = vmatpush3.bf16.msra.mxu1 %v569_v52 }
  0x25   :  { %571 = vmatprep.subr.bf16.mxu1 %v578_v0  ;;  %v399_v0 = vld [vmem:[%s785_s6] ss:$0 sm:$0xff] }
  0x28   :  { %573 = vmatpush3.bf16.msra.mxu1 %v572_v63 }
  0xd7   :  { %v111_v53 = vpop.f32.mrb[0].mxu0 }
  0xd8   :  { %v444_v54 = vpop.f32.mrb[1].mxu0 }
  0xda   :  { %v188_v55 = vpop.f32.mrb[0].mxu1 }
  0xdb   :  { %v189_v57 = vadd.f32 %v188_v55, %v111_v53  ;;  %v451_v58 = vpop.f32.mrb[1].mxu1 }
  0xdd   :  { %v199_v59 = vadd.f32 %v398_v56, %v189_v57 }
  0xdf   :  { %v200_v60 = vmax.f32 %v199_v59, 0.0 }
  0xe1   :  { %485 = vmatmul.mubr.f32.vlgmr.msra.gmra.mrb[2].mxu0 %v200_v60 }
 0x1b4   :  { %v290_v1 = vpop.f32.mrb[2].mxu0 }
 0x1b5   :  { %v291_v2 = vadd.f32 %v399_v0, %v290_v1  ;;  %v486_v3 = vpop.f32.mrb[3].mxu0 }
 0x1b7   :  { %v294_v4 = vmax.f32 %v291_v2, 0.0 }
 0x1b9   :  { %520 = vmatmul.mubr.f32.vlgmr.msra.gmra.mrb[2].mxu1 %v294_v4 }
 0x28c   :  { %v384_v6 = vpop.f32.mrb[2].mxu1 }
 0x28d   :  { %v385_v7 = vadd.f32 %v400_v5, %v384_v6  ;;  %v521_v8 = vpop.f32.mrb[3].mxu1 }
 0x28f   :  { %389 = vst.msk [vmem:[%s787_s9] sm:$0xff] %vm388_vm6, %v385_v7 }

</bundles_post_ra>
